<compile_context>
chip_gen: v7x
topology: tpu7x:2x2x1
jax: 0.10.0
libtpu: 0.0.40
codegen_flags: <defaults>
</compile_context>

<pallas_src>
import jax
import jax.numpy as jnp
from jax.experimental import pallas as pl
from jax.experimental.pallas import tpu as pltpu


_VMEM_BLOCK_BUDGET = 24 * 1024 * 1024  # double-buffered in+out blocks, all gens
_VMEM_LIMIT_BYTES = 48 * 1024 * 1024   # < v7x 64 MiB physical; fine on v5e/v6e


def _round_up(a: int, b: int) -> int:
    return ((a + b - 1) // b) * b


def _cdiv(a: int, b: int) -> int:
    return (a + b - 1) // b


def _outconv_kernel(w_ref, x_ref, o_ref):
    # w_ref: (C_out, C_in)   -- resident weight block
    # x_ref: (C_in, TILE)    -- spatial tile, channels on sublanes, space on lanes
    # o_ref: (C_out, TILE)   -- lane-dense output tile
    o_ref[...] = jnp.dot(
        w_ref[...], x_ref[...], preferred_element_type=jnp.float32
    ).astype(o_ref.dtype)


def outconv_forward(x_nchw, weight):
    """1x1 conv, no bias.

    x_nchw: (N, C_in, H, W) float32
    weight: (C_out, C_in, 1, 1) float32 (PyTorch Conv2d weight layout)
    returns: (N, C_out, H, W) float32
    """
    n, c_in, h, w = x_nchw.shape
    c_out = weight.shape[0]
    hw = h * w

    # NCHW -> (N, C_in, H*W): pure reshape, no data movement, no padding.
    x3 = x_nchw.reshape(n, c_in, hw)
    w_mat = weight.reshape(c_out, c_in)

    # Tile sizing from the VMEM budget (double-buffered input + output, f32).
    bytes_per_lane = 2 * 4 * (c_in + c_out)
    tile = max(128, (_VMEM_BLOCK_BUDGET // bytes_per_lane) // 128 * 128)
    tile = min(tile, _round_up(hw, 128))
    num_tiles = _cdiv(hw, tile)

    # Keep >= 2 grid steps on a parallel axis when possible (v7x has 2 TCs).
    if n * num_tiles < 2 and hw > 128:
        tile = _round_up(_cdiv(hw, 2), 128)
        num_tiles = _cdiv(hw, tile)

    # Put the larger parallel axis first for more even megacore sharding.
    if num_tiles >= n:
        grid = (num_tiles, n)
        imap_x = lambda tb, nb: (nb, 0, tb)
    else:
        grid = (n, num_tiles)
        imap_x = lambda nb, tb: (nb, 0, tb)
    imap_w = lambda a, b: (0, 0)

    cost = pl.CostEstimate(
        flops=2 * n * hw * c_in * c_out,
        transcendentals=0,
        bytes_accessed=4 * (n * hw * (c_in + c_out) + c_out * c_in),
    )

    out3 = pl.pallas_call(
        _outconv_kernel,
        out_shape=jax.ShapeDtypeStruct((n, c_out, hw), x_nchw.dtype),
        grid_spec=pl.GridSpec(
            grid=grid,
            in_specs=[
                # Tiny weight block stays resident across the whole grid.
                pl.BlockSpec((c_out, c_in), imap_w),
                # Input tile: (batch squeezed, C_in, TILE).
                pl.BlockSpec((None, c_in, tile), imap_x),
            ],
            out_specs=pl.BlockSpec((None, c_out, tile), imap_x),
        ),
        compiler_params=pltpu.CompilerParams(
            dimension_semantics=("parallel", "parallel"),
            vmem_limit_bytes=_VMEM_LIMIT_BYTES,
        ),
        cost_estimate=cost,
    )(w_mat, x3)

    return out3.reshape(n, c_out, h, w)


if __name__ == "__main__":
    key = jax.random.PRNGKey(0)
    kx, kw = jax.random.split(key)

    N, C_IN, C_OUT, H, W = 2, 4, 3, 16, 16

    x = jax.random.normal(kx, (N, C_IN, H, W), dtype=jnp.float32)
    # Deterministic Kaiming-uniform-like init for Conv2d(kernel_size=1, bias=False)
    bound = 1.0 / (C_IN ** 0.5)
    weight = jax.random.uniform(
        kw, (C_OUT, C_IN, 1, 1), dtype=jnp.float32, minval=-bound, maxval=bound
    )

    out = outconv_forward(x, weight)
    jax.block_until_ready(out)

    # Sanity check against a plain-JAX reference of the 1x1 conv.
    ref = jnp.einsum("nchw,oc->nohw", x, weight.reshape(C_OUT, C_IN))
    assert out.shape == (N, C_OUT, H, W)
    assert jnp.allclose(out, ref, atol=1e-5, rtol=1e-5)

    print("KERNEL_OK")
</pallas_src>

<mosaic_0001>
module attributes {stable_mosaic.version = 11 : i64} {
  func.func @_outconv_kernel(%arg0: i32, %arg1: i32, %arg2: memref<3x4xf32, #tpu.memory_space<vmem>>, %arg3: memref<1x4x256xf32, #tpu.memory_space<vmem>>, %arg4: memref<1x3x256xf32, #tpu.memory_space<vmem>>) attributes {dimension_semantics = [#tpu.dimension_semantics<parallel>, #tpu.dimension_semantics<parallel>], iteration_bounds = array<i64: 2, 1>, scalar_prefetch = 0 : i64, scratch_operands = 0 : i64, tpu.core_type = #tpu.core_type<tc>, window_params = [{pipeline_mode = #tpu.pipeline_mode<synchronous>, transform_indices = @transform_0, window_bounds = array<i64: 3, 4>}, {transform_indices = @transform_1, window_bounds = array<i64: 1, 4, 256>}, {transform_indices = @transform_2, window_bounds = array<i64: 1, 3, 256>}]} {
    %c0 = arith.constant 0 : index
    %c0_0 = arith.constant 0 : index
    %0 = vector.load %arg2[%c0, %c0_0] : memref<3x4xf32, #tpu.memory_space<vmem>>, vector<3x4xf32>
    %c0_1 = arith.constant 0 : index
    %c0_2 = arith.constant 0 : index
    %c0_3 = arith.constant 0 : index
    %1 = vector.load %arg3[%c0_1, %c0_2, %c0_3] : memref<1x4x256xf32, #tpu.memory_space<vmem>>, vector<1x4x256xf32>
    %2 = vector.shape_cast %1 : vector<1x4x256xf32> to vector<4x256xf32>
    %cst = arith.constant dense<0.000000e+00> : vector<3x256xf32>
    %3 = tpu.matmul %0, %2, %cst {dimension_numbers = #tpu.dot_dimension_numbers<[1], [0], [0], [1], [0, 0, 1, 1], [], []>} : vector<3x4xf32>, vector<4x256xf32>, vector<3x256xf32> -> vector<3x256xf32>
    %c0_4 = arith.constant 0 : index
    %c0_5 = arith.constant 0 : index
    %c0_6 = arith.constant 0 : index
    %4 = vector.load %arg4[%c0_4, %c0_5, %c0_6] : memref<1x3x256xf32, #tpu.memory_space<vmem>>, vector<1x3x256xf32>
    %5 = vector.shape_cast %4 : vector<1x3x256xf32> to vector<3x256xf32>
    %6 = vector.shape_cast %3 : vector<3x256xf32> to vector<1x3x256xf32>
    tpu.vector_store %arg4[%c0_4, %c0_5, %c0_6], %6 {strides = array<i32>} : memref<1x3x256xf32, #tpu.memory_space<vmem>>, vector<1x3x256xf32>,
    return
  }
  func.func @transform_0(%arg0: i32, %arg1: i32) -> (i32, i32) {
    %c0_i32 = arith.constant 0 : i32
    %c0_i32_0 = arith.constant 0 : i32
    %c0_i32_1 = arith.constant 0 : i32
    return %c0_i32, %c0_i32_0 : i32, i32
  }
  func.func @transform_1(%arg0: i32, %arg1: i32) -> (i32, i32, i32) {
    %c0_i32 = arith.constant 0 : i32
    %c0_i32_0 = arith.constant 0 : i32
    return %arg0, %c0_i32, %arg1 : i32, i32, i32
  }
  func.func @transform_2(%arg0: i32, %arg1: i32) -> (i32, i32, i32) {
    %c0_i32 = arith.constant 0 : i32
    %c0_i32_0 = arith.constant 0 : i32
    return %arg0, %c0_i32, %arg1 : i32, i32, i32
  }
}

</mosaic_0001>

<bundles_post_ra>
// kernel: tpu_custom_call.1
= control target key start
LH: loop header
LB: loop body
LE: loop exit
PB: predicated region body
PF: predicated region fallthrough
CT: control target
= control target key end

     0   :  { %7 = vsyncpa [#allocation3], 0  ;;  %s782_s0 = inlined_call_operand.hbm [shape: f32[3,4], index: 0, kind: input, shape index: {}]   ;;  %s783_s1 = inlined_call_operand.hbm [shape: f32[2,4,256], index: 1, kind: input, shape index: {}]   ;;  %s784_s2 = inlined_call_operand.vmem [shape: f32[2,3,256], index: 2, kind: output, shape index: {}]  }
   0x1   :  { %8 = vsyncpa [#allocation5], 0 }
   0x2   :  { %10 = vsyncpa [#allocation5 + $0x1], 0  ;;  %s619_s9 = smov 0   ;;  %s621_s10 = smov 0  }
   0x3   :  { %s623_s11 = smov 0   ;;  %s625_s12 = smov 0  }
   0x4   :  { %s627_s13 = smov 0   ;;  %s629_s14 = smov 0  }
   0x5 LB: > { %s399_s15 = sadd.s32 4294967295, %s599_s14   ;;  %p71_p0 = scmp.ne.s32.totalorder %s583_s10, %s579_s9  ;;  %s599_s14 = sphi %s629_s14, %s16_s14   ;;  %s595_s13 = sphi %s627_s13, %s803_s13   ;;  %s591_s12 = sphi %s625_s12, %s802_s12   ;;  %s587_s11 = sphi %s623_s11, %s801_s11   ;;  %s583_s10 = sphi %s621_s10, %s800_s10   ;;  %s579_s9 = sphi %s619_s9, %s799_s9  }
   0x6   : > { %p649_p1 = scmp.eq.s32.totalorder %s399_s15, 0  ;;  %p401_p2 = scmp.ge.s32.totalorder %s599_s14, 1 }
   0x7   : > { %p110_p3 = scmp.lt.s32.totalorder %s599_s14, 3  ;;  %s601_s19 = smov [#allocation2]  }
   0x8   : > { %s789_s16 = scalar_select %p649_p1, 1, 0 }
   0x9   : > { %p657_p4 = por %p649_p1, %p71_p0  ;;  %p661_p5 = pnand %p401_p2, %p110_p3 }
   0xa   : > { %s123_s20 = sshll.u32 %s601_s19, 4  ;;  %s28_s22 = sadd.s32 1, %s595_s13  ;;  %s124_s20 = int_to_ptr.vmem [resolvable:$true] %s123_s20 }
   0xb   : > { %s790_s17 = scalar_select %p657_p4, 1, 0 }
   0xc   : > { %s791_s18 = scalar_select %p661_p5, 1, 0 }
   0xd   : > { %p425_p6 = pneg %p661_p5  ;;  %s58_s23 = sadd.s32 1, %s587_s11 }
   0xe   : > { %p675_p8 = scmp.ge.s32.totalorder %s28_s22, 2  ;;  %s487_s27 = scalar_lea.hbm %s782_s0, 64 }
   0xf   : > { %p669_p7 = pnand %p425_p6, %p649_p1  ;;  %p488_p9 = scmp.ne.s32.totalorder %s782_s0, %s487_s27 }
  0x10   : > { %s793_s24 = scalar_select %p675_p8, 1, 0 }
  0x11   : > { %p489_p10 = pneg %p669_p7  ;;  %p494_p13 = scmp.lt.u32.totalorder %s487_s27, %s782_s0 }
  0x13   : > { %p490_p11 = pnand %p489_p10, %p488_p9 }
  0x15   : > { %p491_p12 = pneg %p490_p11 }
  0x17   : > { %p496_p0 = pnand %p494_p13, %p491_p12 }
  0x19   : > { %499 = shalt.err (!%p496_p0)
}
  0x1a   : > { %s500_s4 = scalar_lea.vmem %s124_s20, 64  ;;  %p508_p4 = scmp.lt.s32.totalorder %s124_s20, %s124_s20 }
  0x1b   : > { %p501_p2 = scmp.ne.s32.totalorder %s124_s20, %s500_s4  ;;  %p509_p1 = scmp.lt.s32.totalorder %s500_s4, %s500_s4 }
  0x1d   : > { %p503_p3 = pnand %p501_p2, %p489_p10  ;;  %p510_p5 = por %p509_p1, %p508_p4 }
  0x1f   : > { %p504_p6 = pneg %p503_p3 }
  0x21   : > { %p511_p8 = pnand %p510_p5, %p504_p6 }
  0x23   : > { %514 = shalt.err (!%p511_p8)
}
  0x24   : > { %428 = dma.hbm_to_vmem [thread:$0]  (!%p669_p7), %s782_s0, 64, %s124_s20, [#allocation3]  }
  0x25   : > { %p794_p9 = scmp.ne.s32.totalorder %s793_s24, 0  ;;  %p65_p1 = scmp.ne.s32.totalorder %s587_s11, %s583_s10 }
  0x26   : > { %p66_p4 = scmp.eq.s32.totalorder %s599_s14, 0  ;;  %p434_p5 = scmp.lt.s32.totalorder %s599_s14, 2 }
  0x27   : > { %s805_s22 = smov (%p794_p9, %s28_s22), 0  ;;  %s134_s8 = sand.u32 1, %s587_s11  }
  0x28   : > { %s53_s7 = ssub.s32 %s595_s13, %s805_s22  ;;  %p67_p10 = por %p66_p4, %p65_p1 }
  0x29   : > { %p56_p8 = scmp.eq.s32.totalorder %s53_s7, 0  ;;  %s417_s9 = sshll.u32 %s595_s13, 7 }
  0x2a   : > { %s404_s19 = sshll.u32 %s134_s8, 3  ;;  %s715_s20 = scalar_lea.hbm %s783_s1, %s417_s9 }
  0x2b   : > { %s710_s15 = scalar_select %p56_p8, %s587_s11, %s58_s23  }
  0x2c   : > { %s138_s24 = scalar_lea.vmem [#allocation4], %s404_s19  ;;  %p717_p7 = pnand %p434_p5, %p67_p10 }
  0x2d   : > { %s148_s26 = sshll.u32 %s138_s24, 4  ;;  %s135_s23 = scalar_lea.sflag [#allocation5], %s134_s8  ;;  %s721_s26 = int_to_ptr.vmem [resolvable:$true] %s148_s26 }
  0x2e   : > { %s515_s28 = scalar_lea.hbm %s715_s20, 128  ;;  %p517_p12 = pneg %p717_p7 }
  0x2f   : > { %p516_p11 = scmp.ne.s32.totalorder %s715_s20, %s515_s28  ;;  %s520_s3 = scalar_lea.hbm %s783_s1, 256 }
  0x30   : > { %p521_p2 = scmp.lt.u32.totalorder %s715_s20, %s783_s1  ;;  %p522_p3 = scmp.lt.u32.totalorder %s520_s3, %s515_s28 }
  0x31   : > { %p518_p13 = pnand %p517_p12, %p516_p11  ;;  %p524_p9 = scmp.lt.u32.totalorder %s515_s28, %s715_s20 }
  0x32   : > { %p523_p6 = por %p522_p3, %p521_p2 }
  0x33   : > { %p519_p0 = pneg %p518_p13 }
  0x34   : > { %p525_p1 = por %p524_p9, %p523_p6 }
  0x36   : > { %p526_p4 = pnand %p525_p1, %p519_p0 }
  0x38   : > { %529 = shalt.err (!%p526_p4)
}
  0x39   : > { %s530_s6 = scalar_lea.vmem %s721_s26, 128  ;;  %s602_s7 = smov [#allocation4]  }
  0x3a   : > { %p531_p5 = scmp.ne.s32.totalorder %s721_s26, %s530_s6  ;;  %s535_s8 = sshll.u32 %s602_s7, 4  ;;  %s536_s8 = int_to_ptr.vmem [resolvable:$false] %s535_s8 }
  0x3b   : > { %s537_s9 = scalar_lea.vmem %s536_s8, 256  ;;  %p538_p11 = scmp.lt.s32.totalorder %s721_s26, %s536_s8 }
  0x3c   : > { %p533_p8 = pnand %p531_p5, %p517_p12  ;;  %p539_p13 = scmp.lt.s32.totalorder %s537_s9, %s530_s6 }
  0x3e   : > { %p534_p10 = pneg %p533_p8  ;;  %p540_p2 = por %p539_p13, %p538_p11 }
  0x40   : > { %p541_p3 = pnand %p540_p2, %p534_p10 }
  0x42   : > { %544 = shalt.err (!%p541_p3)
}
  0x43   : > { %432 = dma.hbm_to_vmem [thread:$0]  (!%p717_p7), %s715_s20, 128, %s721_s26, %s135_s23  }
  0x44   : > { %p796_p0 = scmp.ne.s32.totalorder %s791_s18, 0 }
  0x45   : > { %p797_p12 = scmp.ne.s32.totalorder (!%p796_p0), %s789_s16, 0 }
  0x46   : > { %157 = sbr.rel (%p796_p0) target bundleno = 303 (0x12f), region = 28 }
  0x4d   : > { %570 = dma.done.wait (%p797_p12), [#allocation3], 64  }
  0x4e   : > { %572 = vsyncadd (%p797_p12), [#allocation3], 4294967232  ;;  %s163_s19 = sand.u32 1, %s583_s10   ;;  %p798_p6 = scmp.ne.s32.totalorder %s790_s17, 0 }
  0x4f   : > { %s409_s21 = sshll.u32 %s163_s19, 3  ;;  %s164_s25 = scalar_lea.sflag [#allocation5], %s163_s19 }
  0x50   : > { %s167_s24 = scalar_lea.vmem [#allocation4], %s409_s21 }
  0x51   : > { %574 = dma.done.wait (%p798_p6), %s164_s25, 128  }
  0x52   : > { %576 = vsyncadd (%p798_p6), %s164_s25, 4294967168  ;;  %v603_v0 = vmov 0.0   ;;  %v204_v1 = vld [vmem:[%s167_s24] sm:$0xff]  ;;  %vm211_vm0 = vcmask 1043456   ;;  %v203_v3 = vld [vmem:[#allocation2] sm:$0x7] }
  0x53   : > { %280 = vmatprep.mubr.f32.mxu0 %v603_v0  ;;  %v206_v2 = vcombine.high %v204_v1, %v204_v1  ;;  %vm207_vm1 = vcmask 31744   ;;  %p194_p7 = scmp.lt.s32.totalorder %s591_s12, 1 }
  0x55   : > { %412 = vmatprep.subr.msk.mxu0 %vm211_vm0, %v206_v2  ;;  %s807_s12 = smov (!%p194_p7, %s591_s12), 1 }
  0x56   : > { %413 = vmatpush1.msk.msra.mxu0 %vm211_vm0, %v204_v1  ;;  %s418_s16 = sshll.u32 %s807_s12, 3 }
  0x57   : > { %414 = vmatmul.mubr.msk.f32.vlgmr.msra.gmra.mrb[0].mxu0 %vm207_vm1, %v203_v3  ;;  %s201_s17 = scalar_lea.vmem %s784_s2, %s418_s16 }
 0x12a   : > { %v282_v4 = vpop.f32.mrb[0].mxu0 }
 0x12b   : > { %v284_v5 = vpop.f32.mrb[1].mxu0 }
 0x12c   : > { %v289_v6 = vcombine.low %v282_v4, %v284_v5 }
 0x12e   : > { %291 = vst [vmem:[%s201_s17] sm:$0x77] %v289_v6 }
 0x12f PF: > { %s16_s14 = sadd.s32 1, %s599_s14   ;;  %s799_s9 = smov %s583_s10 }
 0x130   : > { %p13_p9 = scmp.ge.s32.totalorder %s16_s14, 4   ;;  %s800_s10 = smov %s587_s11 }
 0x131   : > { %s801_s11 = smov %s710_s15  ;;  %s802_s12 = smov %s595_s13 }
 0x132   : > { %s803_s13 = smov %s805_s22  ;;  %15 = sbr.rel (!%p13_p9) target bundleno = 5 (0x5), region = 73 }
 0x139   :  { %322 = vsyncpa [#allocation3], 1 }
 0x13a   :  { %324 = vsyncpa [#allocation3 + $0x1], 1 }
 0x13b   :  { %325 = vsyncpa [#allocation5], 1 }
 0x13c   :  { %327 = vsyncpa [#allocation5 + $0x1], 1 }

</bundles_post_ra>
